<compile_context>
chip_gen: v6e
topology: v6e:2x2x1
jax: 0.10.0
libtpu: 0.0.40
codegen_flags: <defaults>
</compile_context>

<pallas_src>
import math
from functools import partial

import jax
import jax.numpy as jnp
from jax import lax
from jax.experimental import pallas as pl
from jax.experimental.pallas import tpu as pltpu


LANE = 128     # lane-dense classifier output width (real logits in lanes 0:2)
SUBLANE = 8    # sublane-full output rows (real rows in sublanes 0:B)


# ----------------------------------------------------------------------------
# Pallas kernel (single invocation, no grid)
# ----------------------------------------------------------------------------
def _custom_bert_kernel(idx_ref, lh_ref, wmv_ref, wc_ref, bc_ref, out_ref,
                        *, num_head_tokens, out_rows):
    """All-in-one body.

    idx_ref : (B*K,) int32, SMEM      head-token positions, flattened (b-major)
    lh_ref  : (B, S, H) f32, VMEM     BERT last_hidden_state
    wmv_ref : (H, H + D)              [ Wq^T Wk / sqrt(D) | e * Wv^T ] fused weight
    wc_ref  : (H, LANE)               classifier weight^T, zero-padded to 128 lanes
    bc_ref  : (1, LANE)               classifier bias, zero-padded to 128 lanes
    out_ref : (out_rows, LANE) f32    padded logits (rows 0:B, lanes 0:2 are real)
    """
    B, S, H = lh_ref.shape
    K = num_head_tokens

    # (1) CLS embeddings: single contiguous static slice.
    cls_emb = lh_ref[:, 0, :]                                          # (B, H)

    # (2) One fused projection matmul (Wk hoisted into the weight, e folded).
    mv = jnp.dot(cls_emb, wmv_ref[...],
                 preferred_element_type=jnp.float32)                   # (B, H+D)
    m = mv[:, :H]      # (B, H): scores_k = m @ head_tok_k^T
    v_e = mv[:, H:]    # (B, D): already scaled by e

    # (3) Per-head-token attention weights, summed.
    #     sum_k softmax_k(S_k) @ V == (sum_k softmax_k(S_k)) @ V.
    w_sum = jnp.zeros((B, B), jnp.float32)
    for k in range(K):                       # K tiny & static -> unrolled
        # Dynamic row gather straight from the VMEM ref.
        rows = [lh_ref[b, pl.ds(idx_ref[b * K + k], 1), :] for b in range(B)]
        head_tok = jnp.concatenate(rows, axis=0)                       # (B, H)
        # Contract H on both operands (== m @ head_tok.T, no explicit transpose).
        scores = lax.dot_general(m, head_tok, (((1,), (1,)), ((), ())),
                                 preferred_element_type=jnp.float32)   # (B, B)
        mx = jnp.max(scores, axis=-1, keepdims=True)
        ex = jnp.exp(scores - mx)
        denom = jnp.sum(ex, axis=-1, keepdims=True)
        # EUP reciprocal instead of a VALU divide.
        w_sum = w_sum + ex * pl.reciprocal(denom, approx=True)

    attn_e = jnp.dot(w_sum, v_e, preferred_element_type=jnp.float32)   # (B, D)
    final = cls_emb + attn_e                                           # (B, H)

    # (4) Pad LHS rows so the classifier output store is a full unmasked
    #     (out_rows, LANE) vreg store; padded rows are sliced off outside.
    if out_rows > B:
        final = jnp.concatenate(
            [final, jnp.zeros((out_rows - B, H), jnp.float32)], axis=0)
    logits = jnp.dot(final, wc_ref[...],
                     preferred_element_type=jnp.float32) + bc_ref[...]  # (rows, LANE)
    out_ref[...] = logits.astype(out_ref.dtype)


def custom_bert_head(last_hidden, head_token_idx, params_k):
    """Runs the post-BERT portion of CustomBERT.forward in one Pallas call.

    last_hidden:    (B, S, H) f32
    head_token_idx: (B, K) int32
    """
    B, S, H = last_hidden.shape
    K = head_token_idx.shape[1]
    out_rows = max(SUBLANE, ((B + SUBLANE - 1) // SUBLANE) * SUBLANE)

    # Precondition of the in-kernel row gather: indices must lie in [0, S).
    # Clamp here (matches take_along_axis clamping in the jitted reference).
    idx_flat = jnp.clip(head_token_idx.reshape(-1).astype(jnp.int32), 0, S - 1)

    kernel = partial(_custom_bert_kernel, num_head_tokens=K, out_rows=out_rows)

    vmem = pl.BlockSpec(memory_space=pltpu.MemorySpace.VMEM)
    smem = pl.BlockSpec(memory_space=pltpu.MemorySpace.SMEM)

    padded_logits = pl.pallas_call(
        kernel,
        out_shape=jax.ShapeDtypeStruct((out_rows, LANE), jnp.float32),
        in_specs=[smem,   # head_token_idx (flat)
                  vmem,   # last_hidden
                  vmem,   # fused [Wm | e*Wv^T]
                  vmem,   # W_cls^T (lane-padded)
                  vmem],  # b_cls   (lane-padded)
        out_specs=vmem,
    )(idx_flat, last_hidden,
      params_k["wmv"], params_k["wc_t_pad"], params_k["bc_pad"])

    return padded_logits[:B, :2]


# ----------------------------------------------------------------------------
# Glue: synthetic BERT stub + one-time parameter prep (plain JAX)
# ----------------------------------------------------------------------------
# TODO(synk): the pretrained BERT backbone has no Pallas equivalent here; it is
# replaced by a deterministic embedding-table lookup masked by attention_mask.
def synthetic_bert_last_hidden(input_ids, attention_mask, emb_table):
    hid = emb_table[input_ids]                                   # (B, S, H)
    return hid * attention_mask[..., None].astype(hid.dtype)


def prepare_kernel_params(params, e=0.001):
    """One-time prep: fuse Wq/Wk/Wv (+ 1/sqrt(D) and e) into one weight;
    pad classifier weight/bias to 128 lanes."""
    wq_t, wk_t, wv_t = params["wq_t"], params["wk_t"], params["wv_t"]
    H, D = wq_t.shape
    # scores = (cls @ Wq^T) @ (ht @ Wk^T)^T / sqrt(D) = cls @ W_m @ ht^T
    w_m = (wq_t @ wk_t.T) * (1.0 / math.sqrt(D))                 # (H, H)
    wmv = jnp.concatenate([w_m, wv_t * e], axis=1)               # (H, H + D)
    out_dim = params["wc_t"].shape[1]
    wc_pad = jnp.zeros((H, LANE), jnp.float32).at[:, :out_dim].set(params["wc_t"])
    bc_pad = jnp.zeros((1, LANE), jnp.float32).at[:, :out_dim].set(params["bc"])
    return dict(params, wmv=wmv, wc_t_pad=wc_pad, bc_pad=bc_pad)


def custom_bert_forward(input_ids, head_token_idx, attention_mask, params_k):
    last_hidden = synthetic_bert_last_hidden(
        input_ids, attention_mask, params_k["emb"])              # (B, S, H)
    return custom_bert_head(last_hidden, head_token_idx, params_k)


# Pure-JAX reference for validation (literal transcription of the PyTorch code).
def reference_forward(input_ids, head_token_idx, attention_mask, params, e=0.001):
    last_hidden = synthetic_bert_last_hidden(
        input_ids, attention_mask, params["emb"])
    cls_emb = last_hidden[:, 0, :]
    H = last_hidden.shape[-1]
    idx = jnp.broadcast_to(head_token_idx[..., None], head_token_idx.shape + (H,))
    ht = jnp.take_along_axis(last_hidden, idx, axis=1)           # (B, K, H)
    D = params["wq_t"].shape[1]
    acc = jnp.zeros((cls_emb.shape[0], D), jnp.float32)
    for i in range(ht.shape[1]):
        q = cls_emb @ params["wq_t"]
        k = ht[:, i, :] @ params["wk_t"]
        v = cls_emb @ params["wv_t"]
        s = (q @ k.T) / math.sqrt(D)
        w = jax.nn.softmax(s.astype(jnp.float32), axis=-1)
        acc = acc + w @ v
    final = cls_emb + acc * e
    return final @ params["wc_t"] + params["bc"][0]


# ----------------------------------------------------------------------------
# Main
# ----------------------------------------------------------------------------
if __name__ == "__main__":
    B, S, H, K, VOCAB = 2, 8, 32, 3, 50

    key = jax.random.PRNGKey(0)
    k_emb, k_q, k_k, k_v, k_c, k_ids, k_idx = jax.random.split(key, 7)

    params = {
        "emb":  jax.random.normal(k_emb, (VOCAB, H), jnp.float32) * 0.1,
        # nn.Linear(H, H, bias=False).weight is (out, in); store transposed (in, out)
        "wq_t": jax.random.normal(k_q, (H, H), jnp.float32) * (1.0 / math.sqrt(H)),
        "wk_t": jax.random.normal(k_k, (H, H), jnp.float32) * (1.0 / math.sqrt(H)),
        "wv_t": jax.random.normal(k_v, (H, H), jnp.float32) * (1.0 / math.sqrt(H)),
        # nn.Linear(H, 2): weight (2, H) -> store (H, 2); bias (2,) -> store (1, 2)
        "wc_t": jax.random.normal(k_c, (H, 2), jnp.float32) * (1.0 / math.sqrt(H)),
        "bc":   jnp.zeros((1, 2), jnp.float32),
    }
    params_k = prepare_kernel_params(params, e=0.001)

    input_ids = jax.random.randint(k_ids, (B, S), 0, VOCAB, dtype=jnp.int32)
    head_token_idx = jax.random.randint(k_idx, (B, K), 1, S, dtype=jnp.int32)
    attention_mask = jnp.ones((B, S), jnp.int32)

    logits = custom_bert_forward(input_ids, head_token_idx, attention_mask, params_k)
    logits = jax.block_until_ready(logits)

    ref = reference_forward(input_ids, head_token_idx, attention_mask, params)
    assert logits.shape == (B, 2)
    assert jnp.allclose(logits, ref, atol=1e-4, rtol=1e-4), (logits, ref)

    print("KERNEL_OK")
</pallas_src>

<mosaic_0001>
module attributes {stable_mosaic.version = 11 : i64} {
  func.func @_custom_bert_kernel(%arg0: memref<6xi32, #tpu.memory_space<smem>>, %arg1: memref<2x8x32xf32, #tpu.memory_space<vmem>>, %arg2: memref<32x64xf32, #tpu.memory_space<vmem>>, %arg3: memref<32x128xf32, #tpu.memory_space<vmem>>, %arg4: memref<1x128xf32, #tpu.memory_space<vmem>>, %arg5: memref<8x128xf32, #tpu.memory_space<vmem>>) attributes {dimension_semantics = [], scalar_prefetch = 0 : i64, scratch_operands = 0 : i64, tpu.core_type = #tpu.core_type<tc>} {
    %c0 = arith.constant 0 : index
    %c0_0 = arith.constant 0 : index
    %c0_1 = arith.constant 0 : index
    %0 = vector.load %arg1[%c0, %c0_0, %c0_1] : memref<2x8x32xf32, #tpu.memory_space<vmem>>, vector<2x1x32xf32>
    %1 = vector.shape_cast %0 : vector<2x1x32xf32> to vector<2x32xf32>
    %c0_2 = arith.constant 0 : index
    %c0_3 = arith.constant 0 : index
    %2 = vector.load %arg2[%c0_2, %c0_3] : memref<32x64xf32, #tpu.memory_space<vmem>>, vector<32x64xf32>
    %cst = arith.constant dense<0.000000e+00> : vector<2x64xf32>
    %3 = tpu.matmul %1, %2, %cst {dimension_numbers = #tpu.dot_dimension_numbers<[1], [0], [0], [1], [0, 0, 1, 1], [], []>} : vector<2x32xf32>, vector<32x64xf32>, vector<2x64xf32> -> vector<2x64xf32>
    %4 = vector.extract_strided_slice %3 {offsets = [0, 0], sizes = [2, 32], strides = [1, 1]} : vector<2x64xf32> to vector<2x32xf32>
    %5 = vector.extract_strided_slice %3 {offsets = [0, 32], sizes = [2, 32], strides = [1, 1]} : vector<2x64xf32> to vector<2x32xf32>
    %cst_4 = arith.constant 0.000000e+00 : f32
    %6 = vector.broadcast %cst_4 : f32 to vector<2x2xf32>
    %c0_5 = arith.constant 0 : index
    %7 = memref.load %arg0[%c0_5] : memref<6xi32, #tpu.memory_space<smem>>
    %c0_6 = arith.constant 0 : index
    %8 = arith.index_cast %7 : i32 to index
    %c0_7 = arith.constant 0 : index
    %9 = vector.load %arg1[%c0_6, %8, %c0_7] : memref<2x8x32xf32, #tpu.memory_space<vmem>>, vector<1x1x32xf32>
    %10 = vector.shape_cast %9 : vector<1x1x32xf32> to vector<1x32xf32>
    %c3 = arith.constant 3 : index
    %11 = memref.load %arg0[%c3] : memref<6xi32, #tpu.memory_space<smem>>
    %c1 = arith.constant 1 : index
    %12 = arith.index_cast %11 : i32 to index
    %c0_8 = arith.constant 0 : index
    %13 = vector.load %arg1[%c1, %12, %c0_8] : memref<2x8x32xf32, #tpu.memory_space<vmem>>, vector<1x1x32xf32>
    %14 = vector.shape_cast %13 : vector<1x1x32xf32> to vector<1x32xf32>
    %15 = tpu.concatenate %10, %14 in 0 : vector<1x32xf32>, vector<1x32xf32> -> vector<2x32xf32>
    %cst_9 = arith.constant dense<0.000000e+00> : vector<2x2xf32>
    %16 = tpu.matmul %4, %15, %cst_9 {dimension_numbers = #tpu.dot_dimension_numbers<[1], [1], [0], [0], [0, 0, 1, 0], [], []>} : vector<2x32xf32>, vector<2x32xf32>, vector<2x2xf32> -> vector<2x2xf32>
    %cst_10 = arith.constant dense<0xFF800000> : vector<2xf32>
    %17 = vector.multi_reduction <maximumf>, %16, %cst_10 [1] : vector<2x2xf32> to vector<2xf32>
    %18 = vector.shape_cast %17 : vector<2xf32> to vector<2x1xf32>
    %19 = vector.broadcast %18 : vector<2x1xf32> to vector<2x2xf32>
    %20 = arith.subf %16, %19 : vector<2x2xf32>
    %21 = math.exp %20 : vector<2x2xf32>
    %cst_11 = arith.constant dense<0.000000e+00> : vector<2xf32>
    %22 = vector.multi_reduction <add>, %21, %cst_11 [1] : vector<2x2xf32> to vector<2xf32>
    %23 = vector.shape_cast %22 : vector<2xf32> to vector<2x1xf32>
    %24 = tpu.reciprocal %23 {approx = true} : vector<2x1xf32> -> vector<2x1xf32>
    %25 = vector.broadcast %24 : vector<2x1xf32> to vector<2x2xf32>
    %26 = arith.mulf %21, %25 : vector<2x2xf32>
    %27 = arith.addf %6, %26 : vector<2x2xf32>
    %c1_12 = arith.constant 1 : index
    %28 = memref.load %arg0[%c1_12] : memref<6xi32, #tpu.memory_space<smem>>
    %c0_13 = arith.constant 0 : index
    %29 = arith.index_cast %28 : i32 to index
    %c0_14 = arith.constant 0 : index
    %30 = vector.load %arg1[%c0_13, %29, %c0_14] : memref<2x8x32xf32, #tpu.memory_space<vmem>>, vector<1x1x32xf32>
    %31 = vector.shape_cast %30 : vector<1x1x32xf32> to vector<1x32xf32>
    %c4 = arith.constant 4 : index
    %32 = memref.load %arg0[%c4] : memref<6xi32, #tpu.memory_space<smem>>
    %c1_15 = arith.constant 1 : index
    %33 = arith.index_cast %32 : i32 to index
    %c0_16 = arith.constant 0 : index
    %34 = vector.load %arg1[%c1_15, %33, %c0_16] : memref<2x8x32xf32, #tpu.memory_space<vmem>>, vector<1x1x32xf32>
    %35 = vector.shape_cast %34 : vector<1x1x32xf32> to vector<1x32xf32>
    %36 = tpu.concatenate %31, %35 in 0 : vector<1x32xf32>, vector<1x32xf32> -> vector<2x32xf32>
    %cst_17 = arith.constant dense<0.000000e+00> : vector<2x2xf32>
    %37 = tpu.matmul %4, %36, %cst_17 {dimension_numbers = #tpu.dot_dimension_numbers<[1], [1], [0], [0], [0, 0, 1, 0], [], []>} : vector<2x32xf32>, vector<2x32xf32>, vector<2x2xf32> -> vector<2x2xf32>
    %cst_18 = arith.constant dense<0xFF800000> : vector<2xf32>
    %38 = vector.multi_reduction <maximumf>, %37, %cst_18 [1] : vector<2x2xf32> to vector<2xf32>
    %39 = vector.shape_cast %38 : vector<2xf32> to vector<2x1xf32>
    %40 = vector.broadcast %39 : vector<2x1xf32> to vector<2x2xf32>
    %41 = arith.subf %37, %40 : vector<2x2xf32>
    %42 = math.exp %41 : vector<2x2xf32>
    %cst_19 = arith.constant dense<0.000000e+00> : vector<2xf32>
    %43 = vector.multi_reduction <add>, %42, %cst_19 [1] : vector<2x2xf32> to vector<2xf32>
    %44 = vector.shape_cast %43 : vector<2xf32> to vector<2x1xf32>
    %45 = tpu.reciprocal %44 {approx = true} : vector<2x1xf32> -> vector<2x1xf32>
    %46 = vector.broadcast %45 : vector<2x1xf32> to vector<2x2xf32>
    %47 = arith.mulf %42, %46 : vector<2x2xf32>
    %48 = arith.addf %27, %47 : vector<2x2xf32>
    %c2 = arith.constant 2 : index
    %49 = memref.load %arg0[%c2] : memref<6xi32, #tpu.memory_space<smem>>
    %c0_20 = arith.constant 0 : index
    %50 = arith.index_cast %49 : i32 to index
    %c0_21 = arith.constant 0 : index
    %51 = vector.load %arg1[%c0_20, %50, %c0_21] : memref<2x8x32xf32, #tpu.memory_space<vmem>>, vector<1x1x32xf32>
    %52 = vector.shape_cast %51 : vector<1x1x32xf32> to vector<1x32xf32>
    %c5 = arith.constant 5 : index
    %53 = memref.load %arg0[%c5] : memref<6xi32, #tpu.memory_space<smem>>
    %c1_22 = arith.constant 1 : index
    %54 = arith.index_cast %53 : i32 to index
    %c0_23 = arith.constant 0 : index
    %55 = vector.load %arg1[%c1_22, %54, %c0_23] : memref<2x8x32xf32, #tpu.memory_space<vmem>>, vector<1x1x32xf32>
    %56 = vector.shape_cast %55 : vector<1x1x32xf32> to vector<1x32xf32>
    %57 = tpu.concatenate %52, %56 in 0 : vector<1x32xf32>, vector<1x32xf32> -> vector<2x32xf32>
    %cst_24 = arith.constant dense<0.000000e+00> : vector<2x2xf32>
    %58 = tpu.matmul %4, %57, %cst_24 {dimension_numbers = #tpu.dot_dimension_numbers<[1], [1], [0], [0], [0, 0, 1, 0], [], []>} : vector<2x32xf32>, vector<2x32xf32>, vector<2x2xf32> -> vector<2x2xf32>
    %cst_25 = arith.constant dense<0xFF800000> : vector<2xf32>
    %59 = vector.multi_reduction <maximumf>, %58, %cst_25 [1] : vector<2x2xf32> to vector<2xf32>
    %60 = vector.shape_cast %59 : vector<2xf32> to vector<2x1xf32>
    %61 = vector.broadcast %60 : vector<2x1xf32> to vector<2x2xf32>
    %62 = arith.subf %58, %61 : vector<2x2xf32>
    %63 = math.exp %62 : vector<2x2xf32>
    %cst_26 = arith.constant dense<0.000000e+00> : vector<2xf32>
    %64 = vector.multi_reduction <add>, %63, %cst_26 [1] : vector<2x2xf32> to vector<2xf32>
    %65 = vector.shape_cast %64 : vector<2xf32> to vector<2x1xf32>
    %66 = tpu.reciprocal %65 {approx = true} : vector<2x1xf32> -> vector<2x1xf32>
    %67 = vector.broadcast %66 : vector<2x1xf32> to vector<2x2xf32>
    %68 = arith.mulf %63, %67 : vector<2x2xf32>
    %69 = arith.addf %48, %68 : vector<2x2xf32>
    %cst_27 = arith.constant dense<0.000000e+00> : vector<2x32xf32>
    %70 = tpu.matmul %69, %5, %cst_27 {dimension_numbers = #tpu.dot_dimension_numbers<[1], [0], [0], [1], [0, 0, 1, 1], [], []>} : vector<2x2xf32>, vector<2x32xf32>, vector<2x32xf32> -> vector<2x32xf32>
    %71 = arith.addf %1, %70 : vector<2x32xf32>
    %cst_28 = arith.constant 0.000000e+00 : f32
    %72 = vector.broadcast %cst_28 : f32 to vector<6x32xf32>
    %73 = tpu.concatenate %71, %72 in 0 : vector<2x32xf32>, vector<6x32xf32> -> vector<8x32xf32>
    %c0_29 = arith.constant 0 : index
    %c0_30 = arith.constant 0 : index
    %74 = vector.load %arg3[%c0_29, %c0_30] : memref<32x128xf32, #tpu.memory_space<vmem>>, vector<32x128xf32>
    %cst_31 = arith.constant dense<0.000000e+00> : vector<8x128xf32>
    %75 = tpu.matmul %73, %74, %cst_31 {dimension_numbers = #tpu.dot_dimension_numbers<[1], [0], [0], [1], [0, 0, 1, 1], [], []>} : vector<8x32xf32>, vector<32x128xf32>, vector<8x128xf32> -> vector<8x128xf32>
    %c0_32 = arith.constant 0 : index
    %c0_33 = arith.constant 0 : index
    %76 = vector.load %arg4[%c0_32, %c0_33] : memref<1x128xf32, #tpu.memory_space<vmem>>, vector<1x128xf32>
    %77 = vector.broadcast %76 : vector<1x128xf32> to vector<8x128xf32>
    %78 = arith.addf %75, %77 : vector<8x128xf32>
    %c0_34 = arith.constant 0 : index
    %c0_35 = arith.constant 0 : index
    %79 = vector.load %arg5[%c0_34, %c0_35] : memref<8x128xf32, #tpu.memory_space<vmem>>, vector<8x128xf32>
    tpu.vector_store %arg5[%c0_34, %c0_35], %78 {strides = array<i32>} : memref<8x128xf32, #tpu.memory_space<vmem>>, vector<8x128xf32>,
    return
  }
}

</mosaic_0001>

<bundles_post_ra>
// kernel: tpu_custom_call.1
= control target key start
LH: loop header
LB: loop body
LE: loop exit
PB: predicated region body
PF: predicated region fallthrough
CT: control target
= control target key end

     0   :  { %10 = vsyncpa [#allocation5], 0  ;;  %s960_s0 = inlined_call_operand.hbm [shape: s32[6], index: 0, kind: input, shape index: {}]   ;;  %s961_s1 = inlined_call_operand.hbm [shape: f32[2,8,32], index: 1, kind: input, shape index: {}]   ;;  %s962_s2 = inlined_call_operand.hbm [shape: f32[32,64], index: 2, kind: input, shape index: {}]   ;;  %s963_s3 = inlined_call_operand.hbm [shape: f32[32,128], index: 3, kind: input, shape index: {}]   ;;  %s964_s4 = inlined_call_operand.vmem [shape: f32[1,128], index: 4, kind: input, shape index: {}]   ;;  %s965_s5 = inlined_call_operand.hbm [shape: f32[8,128], index: 5, kind: output, shape index: {}]  }
   0x1   :  { %11 = vsyncpa [#allocation3], 0 }
   0x2   :  { %12 = vsyncpa [#allocation8], 0 }
   0x3   :  { %13 = vsyncpa [#allocation4], 0  ;;  %s849_s18 = smov [#allocation7]   ;;  %s850_s20 = smov [#allocation6]  }
   0x4   :  { %s39_s19 = sshll.u32 %s849_s18, 4  ;;  %s27_s21 = sshll.u32 %s850_s20, 4  ;;  %s40_s19 = int_to_ptr.vmem [resolvable:$true] %s39_s19  ;;  %s28_s21 = int_to_ptr.vmem [resolvable:$true] %s27_s21 }
   0x5   :  { %s761_s22 = scalar_lea.vmem %s40_s19, 512  ;;  %p766_p1 = scmp.lt.s32.totalorder %s40_s19, %s40_s19 }
   0x6   :  { %p762_p0 = scmp.ne.s32.totalorder %s40_s19, %s761_s22  ;;  %p767_p2 = scmp.lt.s32.totalorder %s761_s22, %s761_s22 }
   0x8   :  { %p768_p3 = por %p767_p2, %p766_p1 }
   0xa   :  { %p769_p4 = pnand %p768_p3, %p762_p0 }
   0xc   :  { %772 = shalt.err (!%p769_p4)
}
   0xd   :  { %s851_s23 = smov 128   ;;  %s852_s24 = smov 8  }
   0xe   :  { %45 = dma.hbm_to_vmem [thread:$0]  %s962_s2, 512, %s40_s19, [#allocation8], %s851_s23, %s851_s23, %s852_s24  }
   0xf   :  { %s853_s27 = smov [#allocation2]   ;;  %s789_s30 = scalar_lea.vmem %s28_s21, 256 }
  0x10   :  { %21 = dma.hbm_to_smem %s960_s0, 16, %s853_s27, [#allocation5]  }
  0x11   :  { %p790_p5 = scmp.ne.s32.totalorder %s28_s21, %s789_s30  ;;  %p794_p6 = scmp.lt.s32.totalorder %s28_s21, %s28_s21 }
  0x12   :  { %p795_p7 = scmp.lt.s32.totalorder %s789_s30, %s789_s30 }
  0x14   :  { %p796_p8 = por %p795_p7, %p794_p6 }
  0x16   :  { %p797_p9 = pnand %p796_p8, %p790_p5 }
  0x18   :  { %800 = shalt.err (!%p797_p9)
}
  0x19   :  { %33 = dma.hbm_to_vmem [thread:$0]  %s961_s1, 256, %s28_s21, [#allocation3], %s851_s23, %s851_s23, %s852_s24  }
  0x1a   :  { %s854_s8 = smov [#allocation9]  }
  0x1b   :  { %s51_s9 = sshll.u32 %s854_s8, 4  ;;  %s52_s9 = int_to_ptr.vmem [resolvable:$true] %s51_s9 }
  0x1c   :  { %s809_s2 = scalar_lea.vmem %s52_s9, 512  ;;  %p814_p11 = scmp.lt.s32.totalorder %s52_s9, %s52_s9 }
  0x1d   :  { %p810_p10 = scmp.ne.s32.totalorder %s52_s9, %s809_s2  ;;  %p815_p12 = scmp.lt.s32.totalorder %s809_s2, %s809_s2 }
  0x1f   :  { %p816_p13 = por %p815_p12, %p814_p11 }
  0x21   :  { %p817_p0 = pnand %p816_p13, %p810_p10 }
  0x23   :  { %820 = shalt.err (!%p817_p0)
}
  0x24   :  { %57 = dma.hbm_to_vmem [thread:$0]  %s963_s3, 512, %s52_s9, [#allocation8], %s851_s23, %s851_s23, %s852_s24  }
  0x25   :  { %841 = dma.done.wait [#allocation5], 16  }
  0x26   :  { %842 = vsyncadd [#allocation5], 4294967280 }
  0x27   :  { %843 = dma.done.wait [#allocation3], 256  }
  0x28   :  { %844 = vsyncadd [#allocation3], 4294967040 }
  0x29   :  { %845 = dma.done.wait [#allocation8], 1024  }
  0x2a   :  { %846 = vsyncadd [#allocation8], 4294966272 }
  0x2b   :  { %72 = sfence }
  0x2c   :  { %v78_v0 = vld [vmem:[#allocation7 + $0x18] sm:$0xff]  ;;  %v855_v1 = vmov 0.0   ;;  %v77_v2 = vld [vmem:[#allocation7 + $0x10] sm:$0xff]  ;;  %vm856_vm0 = vmmov 0   ;;  %s157_s1 = sld [smem:[#allocation2]]  ;;  %v76_v5 = vld [vmem:[#allocation7 + $0x8] sm:$0xff] }
  0x2d   :  { %689 = vmatprep.subr.mxu0 %v855_v1  ;;  %697 = vmatprep.mubr.msk.f32.mxu0 %vm856_vm0, %v855_v1  ;;  %v904_v3 = vld [vmem:[#allocation6 + $0x8] sm:$0x1]  ;;  %v909_v6 = vld [vmem:[#allocation6] sm:$0x1]  ;;  %vm82_vm1 = vcmask 1041409   ;;  %s653_s3 = sld [smem:[#allocation2 + $0x3]] }
  0x2e   :  { %690 = vmatpush3.msra.mxu0 %v78_v0  ;;  %v81_v4 = vrot.slane %v904_v3, 7  ;;  %700 = vmatprep.subr.mxu1 %v855_v1  ;;  %v75_v7 = vld [vmem:[#allocation7] sm:$0xff]  ;;  %vm84_vm2 = vcmask 261120   ;;  %vm167_vm3 = vcmask 1040384   ;;  %s658_s13 = sld [smem:[#allocation2 + $0x4]]  ;;  %vm245_vm4 = vcmask 9216  }
  0x2f   :  { %691 = vmatprep.subr.mxu0 %v855_v1  ;;  %702 = vmatprep.mubr.msk.f32.mxu1 %vm856_vm0, %v855_v1  ;;  %s657_s14 = sld [smem:[#allocation2 + $0x1]]  ;;  %s857_s21 = smov 96   ;;  %vm456_vm5 = vcmask 1041408   ;;  %vm452_vm6 = vcmask 15360   ;;  %v544_v59 = vld [vmem:[#allocation9 + $0x18] sm:$0xff]  ;;  %v543_v60 = vld [vmem:[#allocation9 + $0x10] sm:$0xff] }
  0x30   :  { %692 = vmatpush3.msra.mxu0 %v77_v2  ;;  %v83_v8 = vsel %vm82_vm1, %v81_v4, %v909_v6  ;;  %s663_s15 = sld [smem:[#allocation2 + $0x5]]  ;;  %v542_v61 = vld [vmem:[#allocation9 + $0x8] sm:$0xff]  ;;  %v541_v62 = vld [vmem:[#allocation9] sm:$0xff]  ;;  %s858_s24 = smov [#allocation10]  }
  0x31   :  { %693 = vmatprep.subr.mxu0 %v855_v1  ;;  %s662_s16 = sld [smem:[#allocation2 + $0x2]]  ;;  %s632_s25 = sshll.u32 %s858_s24, 4  ;;  %s633_s25 = int_to_ptr.vmem [resolvable:$true] %s632_s25 }
  0x32   :  { %694 = vmatpush3.msra.mxu0 %v76_v5  ;;  %s158_s11 = scalar_lea.vmem [#allocation6], %s157_s1  ;;  %s821_s26 = scalar_lea.vmem %s633_s25, 128 }
  0x33   :  { %695 = vmatprep.subr.mxu0 %v855_v1  ;;  %v159_v9 = vld [vmem:[%s158_s11] sm:$0x1]  ;;  %s644_s12 = scalar_lea.vmem [#allocation6], %s653_s3  ;;  %p822_p1 = scmp.ne.s32.totalorder %s633_s25, %s821_s26 }
  0x34   :  { %696 = vmatpush3.msra.mxu0 %v75_v7  ;;  %v654_v10 = vld [vmem:[%s644_s12 + $0x8] sm:$0x1]  ;;  %s647_s17 = scalar_lea.vmem [#allocation6], %s658_s13  ;;  %p826_p2 = scmp.lt.s32.totalorder %s633_s25, %s633_s25 }
  0x35   :  { %698 = vmatmul.mubr.msk.f32.vlgmr.msra.gmra.mxu0 %vm84_vm2, %v83_v8  ;;  %720 = vmatprep.subr.mxu0 %v855_v1  ;;  %v165_v11 = vrot.slane %v654_v10, 7  ;;  %v659_v13 = vld [vmem:[%s647_s17 + $0x8] sm:$0x1]  ;;  %s259_s18 = scalar_lea.vmem [#allocation6], %s657_s14  ;;  %p827_p3 = scmp.lt.s32.totalorder %s821_s26, %s821_s26 }
  0x36   :  { %728 = vmatprep.mubr.msk.f32.mxu0 %vm856_vm0, %v855_v1  ;;  %v266_v14 = vrot.slane %v659_v13, 7  ;;  %v260_v15 = vld [vmem:[%s259_s18] sm:$0x1]  ;;  %s650_s19 = scalar_lea.vmem [#allocation6], %s663_s15  ;;  %721 = vmatpush3.msra.mxu0 %v544_v59 }
  0x37   :  { %v168_v12 = vsel %vm167_vm3, %v159_v9, %v165_v11  ;;  %v664_v16 = vld [vmem:[%s650_s19 + $0x8] sm:$0x1]  ;;  %s355_s20 = scalar_lea.vmem [#allocation6], %s662_s16  ;;  %722 = vmatprep.subr.mxu0 %v855_v1  ;;  %p828_p4 = por %p827_p3, %p826_p2 }
  0x38   :  { %701 = vmatpush3.xpose.msk.msra.mxu1 %vm84_vm2, %v168_v12  ;;  %v268_v17 = vsel %vm167_vm3, %v260_v15, %v266_v14  ;;  %v362_v18 = vrot.slane %v664_v16, 7  ;;  %v356_v20 = vld [vmem:[%s355_s20] sm:$0x1]  ;;  %723 = vmatpush3.msra.mxu0 %v543_v60 }
  0x39   :  { %705 = vmatprep.subr.mxu1 %v855_v1  ;;  %724 = vmatprep.subr.mxu0 %v855_v1  ;;  %p829_p5 = pnand %p828_p4, %p822_p1 }
  0x3a   :  { %v364_v22 = vsel %vm167_vm3, %v356_v20, %v362_v18  ;;  %725 = vmatpush3.msra.mxu0 %v542_v61 }
  0x3b   :  { %726 = vmatprep.subr.mxu0 %v855_v1 }
  0x3c   :  { %727 = vmatpush3.msra.mxu0 %v541_v62 }
  0xf5   :  { %v153_v19 = vpop.f32.mrf.mxu0 }
  0xf6   :  { %703 = vmatmul.mubr.msk.f32.vlgmr.msra.gmra.mxu1 %vm84_vm2, %v153_v19 }
  0xf7   :  { %706 = vmatpush3.xpose.msk.msra.mxu1 %vm84_vm2, %v268_v17  ;;  %v699_v21 = vpop.f32.mrf.mxu0  ;;  %707 = vmatprep.mubr.msk.f32.mxu1 %vm856_vm0, %v855_v1 }
  0xf8   :  { %710 = vmatprep.subr.mxu1 %v855_v1 }
  0xfa   :  { %708 = vmatmul.mubr.msk.f32.vlgmr.msra.gmra.mxu1 %vm84_vm2, %v153_v19 }
  0xfb   :  { %711 = vmatpush3.xpose.msk.msra.mxu1 %vm84_vm2, %v364_v22  ;;  %712 = vmatprep.mubr.msk.f32.mxu1 %vm856_vm0, %v855_v1 }
  0xfc   :  { %715 = vmatprep.subr.mxu1 %v855_v1 }
  0xfe   :  { %713 = vmatmul.mubr.msk.f32.vlgmr.msra.gmra.mxu1 %vm84_vm2, %v153_v19 }
  0xff   :  { %717 = vmatprep.mubr.msk.f32.mxu1 %vm856_vm0, %v855_v1  ;;  %v669_v1 = vld [vmem:[%s964_s4] ss:$0 sm:$0xff] }
 0x1b6   :  { %v241_v23 = vpop.f32.mrf.mxu1 }
 0x1b7   :  { %v246_v24 = vsel %vm245_vm4, %v241_v23, -inf }
 0x1b8   :  { %247 = vmax.xlane.f32.xlu0 %v246_v24  ;;  %v704_v25 = vpop.f32.mrf.mxu1 }
 0x1ba   :  { %v338_v26 = vpop.f32.mrf.mxu1 }
 0x1bb   :  { %v342_v27 = vsel %vm245_vm4, %v338_v26, -inf }
 0x1bc   :  { %343 = vmax.xlane.f32.xlu0 %v342_v27  ;;  %v709_v28 = vpop.f32.mrf.mxu1 }
 0x1be   :  { %v434_v29 = vpop.f32.mrf.mxu1 }
 0x1bf   :  { %v438_v30 = vsel %vm245_vm4, %v434_v29, -inf }
 0x1c0   :  { %439 = vmax.xlane.f32.xlu1 %v438_v30  ;;  %v714_v31 = vpop.f32.mrf.mxu1 }
 0x241   :  { %v248_v32 = vpop.xlane.xlu0 %247 }
 0x242   :  { %v249_v33 = vsub.f32 %v241_v23, %v248_v32 }
 0x244   :  { %v250_v34 = vmul.f32 1.442695, %v249_v33 }
 0x245   :  { %v344_v35 = vpop.xlane.xlu0 %343 }
 0x246   :  { %741 = vpow2.f32 %v250_v34  ;;  %v345_v36 = vsub.f32 %v338_v26, %v344_v35 }
 0x248   :  { %v346_v37 = vmul.f32 1.442695, %v345_v36 }
 0x249   :  { %v440_v38 = vpop.xlane.xlu1 %439 }
 0x24a   :  { %743 = vpow2.f32 %v346_v37  ;;  %v441_v39 = vsub.f32 %v434_v29, %v440_v38 }
 0x24c   :  { %v442_v40 = vmul.f32 1.442695, %v441_v39 }
 0x24e   :  { %745 = vpow2.f32 %v442_v40 }
 0x253   :  { %v742_v41 = vpop.eup %741 }
 0x254   :  { %v252_v42 = vsel %vm245_vm4, %v742_v41, 0.0 }
 0x255   :  { %253 = vadd.xlane.f32.xlu1 %v252_v42 }
 0x257   :  { %v744_v43 = vpop.eup %743 }
 0x258   :  { %v348_v44 = vsel %vm245_vm4, %v744_v43, 0.0 }
 0x259   :  { %349 = vadd.xlane.f32.xlu0 %v348_v44 }
 0x25b   :  { %v746_v45 = vpop.eup %745 }
 0x25c   :  { %v444_v46 = vsel %vm245_vm4, %v746_v45, 0.0 }
 0x25d   :  { %445 = vadd.xlane.f32.xlu1 %v444_v46 }
 0x26f   :  { %450 = vrot.lane.b32.xlu0 %v153_v19, %s857_s21 }
 0x2de   :  { %v254_v47 = vpop.xlane.xlu1 %253 }
 0x2df   :  { %747 = vrcp.f32 %v254_v47 }
 0x2e2   :  { %v350_v48 = vpop.xlane.xlu0 %349 }
 0x2e3   :  { %749 = vrcp.f32 %v350_v48 }
 0x2e6   :  { %v451_v49 = vpop.permute.xlu0 %450  ;;  %v446_v50 = vpop.xlane.xlu1 %445 }
 0x2e7   :  { %751 = vrcp.f32 %v446_v50  ;;  %716 = vmatpush3.msk.msra.mxu1 %vm456_vm5, %v451_v49 }
 0x2ec   :  { %v748_v51 = vpop.eup %747 }
 0x2ed   :  { %v256_v54 = vmul.f32 %v748_v51, %v742_v41 }
 0x2f0   :  { %v750_v52 = vpop.eup %749 }
 0x2f1   :  { %v352_v53 = vmul.f32 %v750_v52, %v744_v43 }
 0x2f3   :  { %v353_v57 = vadd.f32 %v352_v53, %v256_v54 }
 0x2f4   :  { %v752_v55 = vpop.eup %751 }
 0x2f5   :  { %v448_v56 = vmul.f32 %v752_v55, %v746_v45 }
 0x2f7   :  { %v449_v58 = vadd.f32 %v448_v56, %v353_v57 }
 0x2f9   :  { %718 = vmatmul.mubr.msk.f32.vlgmr.msra.gmra.mxu1 %vm452_vm6, %v449_v58 }
 0x3b9   :  { %v525_v63 = vpop.f32.mrf.mxu1 }
 0x3ba   :  { %v530_v0 = vrot.slane %v525_v63, 1  ;;  %v533_v5 = vadd.f32 %v525_v63, %v909_v6 }
 0x3bb   :  { %v719_v2 = vpop.f32.mrf.mxu1 }
 0x3bc   :  { %v534_v4 = vadd.f32 %v530_v0, %v904_v3 }
 0x3be   :  { %v537_v7 = vrot.slane %v534_v4, 7 }
 0x3c0   :  { %v538_v8 = vsel %vm82_vm1, %v537_v7, %v533_v5 }
 0x3c1   :  { %v540_v9 = vsel %vm456_vm5, %v538_v8, 0.0 }
 0x3c2   :  { %729 = vmatmul.mubr.msk.f32.vlgmr.msra.gmra.mxu0 %vm84_vm2, %v540_v9 }
 0x482   :  { %v621_v10 = vpop.f32.mrf.mxu0 }
 0x483   :  { %v622_v11 = vadd.f32 %v669_v1, %v621_v10 }
 0x484   :  { %v730_v12 = vpop.f32.mrf.mxu0 }
 0x485   :  { %625 = vst [vmem:[#allocation10] sm:$0xff] %v622_v11 }
 0x486   :  { %832 = shalt.err (!%p829_p5)
}
 0x487   :  { %635 = dma.vmem_to_hbm [thread:$0]  %s633_s25, 128, %s965_s5, [#allocation4]  }
 0x488   :  { %847 = dma.done.wait [#allocation4], 128  }
 0x489   :  { %848 = vsyncadd [#allocation4], 4294967168 }
 0x48a   :  { %639 = vsyncpa [#allocation3], 1 }
 0x48b   :  { %640 = vsyncpa [#allocation8], 1 }
 0x48c   :  { %641 = vsyncpa [#allocation4], 1 }
 0x48d   :  { %642 = vsyncpa [#allocation5], 1 }

</bundles_post_ra>
